<compile_context>
chip_gen: v5e
topology: v5e:2x2
jax: 0.10.0
libtpu: 0.0.40
codegen_flags: <defaults>
</compile_context>

<pallas_src>
import functools

import jax
import jax.numpy as jnp
from jax.experimental import pallas as pl
from jax.experimental.pallas import tpu as pltpu

# Model dims (fixed by the PyTorch module).
IN = 8        # input features  (current_pos 2 + goal_pos 2 + walls 4)
HID = 8       # hidden units
OUT = 4       # action probabilities
LANES = 128   # TPU lane width; layer-2 weights/bias/output padded to this

# Packed parameter slab layout: one aligned (24, 128) f32 buffer, built once.
#   rows  0: 8, cols 0:HID -> W1^T (in, hid)
#   rows  8:16, cols 0:OUT -> W2^T (hid, out)   (cols OUT:128 are zero)
#   row  16   , cols 0:HID -> b1
#   row  17   , cols 0:OUT -> b2                (cols OUT:128 are ~-inf so the
#                                                padded lanes softmax to 0)
W1_ROW = 0
W2_ROW = 8
B1_ROW = 16
B2_ROW = 17
P_ROWS = 24          # padded to a multiple of 8 sublanes
NEG = -1e30          # "minus infinity" for padded logit lanes


def prepare_params(w1, b1, w2, b2):
    """One-time parameter prep (PyTorch Linear layout: w1 (HID,IN), b1 (HID,),
    w2 (OUT,HID), b2 (OUT,)). Returns a single (P_ROWS, LANES) f32 slab so the
    kernel needs only one aligned, resident weight buffer."""
    p = jnp.zeros((P_ROWS, LANES), jnp.float32)
    p = p.at[W1_ROW:W1_ROW + IN, 0:HID].set(jnp.transpose(w1).astype(jnp.float32))
    p = p.at[W2_ROW:W2_ROW + HID, 0:OUT].set(jnp.transpose(w2).astype(jnp.float32))
    p = p.at[B1_ROW, 0:HID].set(b1.astype(jnp.float32))
    p = p.at[B2_ROW, :].set(jnp.full((LANES,), NEG, jnp.float32))
    p = p.at[B2_ROW, 0:OUT].set(b2.astype(jnp.float32))
    return p


def agent_mlp_kernel(p_ref, x_ref, o_ref):
    """x: (BB, IN) batch block of flattened observations.
    o: (BB, LANES) lane-dense softmax output (cols 0:OUT are meaningful).
    All math in f32 on the VPU/EUP; the matmuls are far too small for the MXU,
    so they are unrolled rank-1 broadcast-multiply accumulations."""
    x = x_ref[...]
    bb = x.shape[0]

    w1t = p_ref[W1_ROW:W1_ROW + IN, 0:HID]        # (IN, HID)
    b1 = p_ref[B1_ROW:B1_ROW + 1, 0:HID]          # (1, HID)
    w2t = p_ref[W2_ROW:W2_ROW + HID, :]           # (HID, LANES), zero-padded
    b2 = p_ref[B2_ROW:B2_ROW + 1, :]              # (1, LANES), NEG-padded

    # Layer 1: h = relu(x @ W1^T + b1)  -- pure VPU.
    h = jnp.broadcast_to(b1, (bb, HID))
    for i in range(IN):                           # static unroll (IN = 8)
        h = h + x[:, i:i + 1] * w1t[i:i + 1, :]
    h = jnp.maximum(h, 0.0)

    # Layer 2: logits = h @ W2^T + b2, padded to the full 128-lane width so
    # the final store is a dense (unmasked) vst.
    logits = jnp.broadcast_to(b2, (bb, LANES))
    for j in range(HID):                          # static unroll (HID = 8)
        logits = logits + h[:, j:j + 1] * w2t[j:j + 1, :]

    # Numerically-stable softmax over the last dim. Padded lanes hold ~-1e30,
    # so exp underflows to exactly 0 and they do not perturb the result.
    m = jnp.max(logits, axis=-1, keepdims=True)
    e = jnp.exp(logits - m)
    denom = jnp.sum(e, axis=-1, keepdims=True)
    r = pl.reciprocal(denom, approx=True)         # EUP slot (otherwise idle)
    r = r * (2.0 - denom * r)                     # one Newton step -> f32 accuracy
    o_ref[...] = e * r


def _round_up(n, m):
    return ((n + m - 1) // m) * m


@functools.partial(jax.jit, static_argnames=("block_b",))
def agent_forward_batched(packed_params, states, block_b=256):
    """Batched forward: states (B, IN) -> action probabilities (B, OUT).

    The batch is padded to a multiple of the batch block and tiled over a 1-D
    grid marked "parallel" (v7x megacore splits the blocks across its two
    TensorCores). Output is produced lane-dense (B, 128) and sliced to (B, OUT).
    """
    B = states.shape[0]
    bb = min(block_b, _round_up(B, 8))
    bp = _round_up(B, bb)
    x = jnp.pad(states.astype(jnp.float32), ((0, bp - B), (0, 0)))

    out = pl.pallas_call(
        agent_mlp_kernel,
        out_shape=jax.ShapeDtypeStruct((bp, LANES), jnp.float32),
        grid=(bp // bb,),
        in_specs=[
            pl.BlockSpec((P_ROWS, LANES), lambda i: (0, 0)),  # params stay resident
            pl.BlockSpec((bb, IN), lambda i: (i, 0)),
        ],
        out_specs=pl.BlockSpec((bb, LANES), lambda i: (i, 0)),
        compiler_params=pltpu.CompilerParams(
            dimension_semantics=("parallel",)),
    )(packed_params, x)
    return out[:B, :OUT]


def agent_forward(packed_params, state):
    """Single-observation forward matching Agent.forward: state (IN,) -> (OUT,)."""
    return agent_forward_batched(packed_params, state.reshape(1, IN), block_b=8)[0]


def make_state(current_pos, goal_pos, walls):
    """Mirror of torch.cat([current_pos, goal_pos, walls]).flatten()."""
    return jnp.concatenate([
        jnp.asarray(current_pos, jnp.float32).reshape(-1),
        jnp.asarray(goal_pos, jnp.float32).reshape(-1),
        jnp.asarray(walls, jnp.float32).reshape(-1),
    ])


def reference_forward(states, w1, b1, w2, b2):
    h = jnp.maximum(states @ w1.T + b1, 0.0)
    return jax.nn.softmax(h @ w2.T + b2, axis=-1)


if __name__ == "__main__":
    input_size, hidden_size, output_size = IN, HID, OUT

    key = jax.random.PRNGKey(0)
    (k_cur, k_goal, k_walls, k_w1, k_b1, k_w2, k_b2,
     k_batch, k_batch2) = jax.random.split(key, 9)

    # Parameters in PyTorch Linear layout: weight (out, in), bias (out,).
    w1 = jax.random.normal(k_w1, (hidden_size, input_size), jnp.float32) * 0.5
    b1 = jax.random.normal(k_b1, (hidden_size,), jnp.float32) * 0.1
    w2 = jax.random.normal(k_w2, (output_size, hidden_size), jnp.float32) * 0.5
    b2 = jax.random.normal(k_b2, (output_size,), jnp.float32) * 0.1

    # One-time parameter packing (hoisted out of the per-call path).
    params = prepare_params(w1, b1, w2, b2)

    # --- 1) Single observation: exact Agent.forward semantics --------------
    current_pos = jax.random.uniform(k_cur, (2,), jnp.float32)
    goal_pos = jax.random.uniform(k_goal, (2,), jnp.float32)
    walls = (jax.random.uniform(k_walls, (4,), jnp.float32) > 0.5).astype(jnp.float32)
    state = make_state(current_pos, goal_pos, walls)

    out1 = jax.block_until_ready(agent_forward(params, state))
    ref1 = reference_forward(state, w1, b1, w2, b2)
    assert out1.shape == (output_size,)
    assert jnp.allclose(out1, ref1, atol=1e-4, rtol=1e-4), (out1, ref1)
    assert jnp.allclose(jnp.sum(out1), 1.0, atol=1e-4)

    # --- 2) Batched (many agents per call), single grid step ---------------
    B = 64
    states = jax.random.uniform(k_batch, (B, input_size), jnp.float32)
    out_b = jax.block_until_ready(agent_forward_batched(params, states, block_b=256))
    ref_b = reference_forward(states, w1, b1, w2, b2)
    assert out_b.shape == (B, output_size)
    assert jnp.allclose(out_b, ref_b, atol=1e-4, rtol=1e-4)
    assert jnp.allclose(jnp.sum(out_b, axis=-1), jnp.ones((B,)), atol=1e-4)

    # --- 3) Batched with a multi-block "parallel" grid (v7x megacore path) -
    B2 = 200
    states2 = jax.random.uniform(k_batch2, (B2, input_size), jnp.float32)
    out_b2 = jax.block_until_ready(agent_forward_batched(params, states2, block_b=64))
    ref_b2 = reference_forward(states2, w1, b1, w2, b2)
    assert out_b2.shape == (B2, output_size)
    assert jnp.allclose(out_b2, ref_b2, atol=1e-4, rtol=1e-4)

    print("KERNEL_OK")
</pallas_src>

<mosaic_0001>
module attributes {stable_mosaic.version = 11 : i64} {
  func.func @agent_mlp_kernel(%arg0: i32, %arg1: memref<24x128xf32, #tpu.memory_space<vmem>>, %arg2: memref<8x8xf32, #tpu.memory_space<vmem>>, %arg3: memref<8x128xf32, #tpu.memory_space<vmem>>) attributes {dimension_semantics = [#tpu.dimension_semantics<parallel>], iteration_bounds = array<i64: 1>, scalar_prefetch = 0 : i64, scratch_operands = 0 : i64, tpu.core_type = #tpu.core_type<tc>, window_params = [{pipeline_mode = #tpu.pipeline_mode<synchronous>, transform_indices = @transform_0, window_bounds = array<i64: 24, 128>}, {transform_indices = @transform_1, window_bounds = array<i64: 8, 8>}, {transform_indices = @transform_2, window_bounds = array<i64: 8, 128>}]} {
    %c0 = arith.constant 0 : index
    %c0_0 = arith.constant 0 : index
    %0 = vector.load %arg2[%c0, %c0_0] : memref<8x8xf32, #tpu.memory_space<vmem>>, vector<8x8xf32>
    %c0_1 = arith.constant 0 : index
    %c0_2 = arith.constant 0 : index
    %1 = vector.load %arg1[%c0_1, %c0_2] : memref<24x128xf32, #tpu.memory_space<vmem>>, vector<8x8xf32>
    %c16 = arith.constant 16 : index
    %c0_3 = arith.constant 0 : index
    %2 = vector.load %arg1[%c16, %c0_3] : memref<24x128xf32, #tpu.memory_space<vmem>>, vector<1x8xf32>
    %c8 = arith.constant 8 : index
    %c0_4 = arith.constant 0 : index
    %3 = vector.load %arg1[%c8, %c0_4] : memref<24x128xf32, #tpu.memory_space<vmem>>, vector<8x128xf32>
    %c17 = arith.constant 17 : index
    %c0_5 = arith.constant 0 : index
    %4 = vector.load %arg1[%c17, %c0_5] : memref<24x128xf32, #tpu.memory_space<vmem>>, vector<1x128xf32>
    %5 = vector.shape_cast %2 : vector<1x8xf32> to vector<1x8xf32>
    %6 = vector.broadcast %5 : vector<1x8xf32> to vector<8x8xf32>
    %7 = vector.extract_strided_slice %0 {offsets = [0, 0], sizes = [8, 1], strides = [1, 1]} : vector<8x8xf32> to vector<8x1xf32>
    %8 = vector.extract_strided_slice %1 {offsets = [0, 0], sizes = [1, 8], strides = [1, 1]} : vector<8x8xf32> to vector<1x8xf32>
    %9 = vector.broadcast %7 : vector<8x1xf32> to vector<8x8xf32>
    %10 = vector.broadcast %8 : vector<1x8xf32> to vector<8x8xf32>
    %11 = arith.mulf %9, %10 : vector<8x8xf32>
    %12 = arith.addf %6, %11 : vector<8x8xf32>
    %13 = vector.extract_strided_slice %0 {offsets = [0, 1], sizes = [8, 1], strides = [1, 1]} : vector<8x8xf32> to vector<8x1xf32>
    %14 = vector.extract_strided_slice %1 {offsets = [1, 0], sizes = [1, 8], strides = [1, 1]} : vector<8x8xf32> to vector<1x8xf32>
    %15 = vector.broadcast %13 : vector<8x1xf32> to vector<8x8xf32>
    %16 = vector.broadcast %14 : vector<1x8xf32> to vector<8x8xf32>
    %17 = arith.mulf %15, %16 : vector<8x8xf32>
    %18 = arith.addf %12, %17 : vector<8x8xf32>
    %19 = vector.extract_strided_slice %0 {offsets = [0, 2], sizes = [8, 1], strides = [1, 1]} : vector<8x8xf32> to vector<8x1xf32>
    %20 = vector.extract_strided_slice %1 {offsets = [2, 0], sizes = [1, 8], strides = [1, 1]} : vector<8x8xf32> to vector<1x8xf32>
    %21 = vector.broadcast %19 : vector<8x1xf32> to vector<8x8xf32>
    %22 = vector.broadcast %20 : vector<1x8xf32> to vector<8x8xf32>
    %23 = arith.mulf %21, %22 : vector<8x8xf32>
    %24 = arith.addf %18, %23 : vector<8x8xf32>
    %25 = vector.extract_strided_slice %0 {offsets = [0, 3], sizes = [8, 1], strides = [1, 1]} : vector<8x8xf32> to vector<8x1xf32>
    %26 = vector.extract_strided_slice %1 {offsets = [3, 0], sizes = [1, 8], strides = [1, 1]} : vector<8x8xf32> to vector<1x8xf32>
    %27 = vector.broadcast %25 : vector<8x1xf32> to vector<8x8xf32>
    %28 = vector.broadcast %26 : vector<1x8xf32> to vector<8x8xf32>
    %29 = arith.mulf %27, %28 : vector<8x8xf32>
    %30 = arith.addf %24, %29 : vector<8x8xf32>
    %31 = vector.extract_strided_slice %0 {offsets = [0, 4], sizes = [8, 1], strides = [1, 1]} : vector<8x8xf32> to vector<8x1xf32>
    %32 = vector.extract_strided_slice %1 {offsets = [4, 0], sizes = [1, 8], strides = [1, 1]} : vector<8x8xf32> to vector<1x8xf32>
    %33 = vector.broadcast %31 : vector<8x1xf32> to vector<8x8xf32>
    %34 = vector.broadcast %32 : vector<1x8xf32> to vector<8x8xf32>
    %35 = arith.mulf %33, %34 : vector<8x8xf32>
    %36 = arith.addf %30, %35 : vector<8x8xf32>
    %37 = vector.extract_strided_slice %0 {offsets = [0, 5], sizes = [8, 1], strides = [1, 1]} : vector<8x8xf32> to vector<8x1xf32>
    %38 = vector.extract_strided_slice %1 {offsets = [5, 0], sizes = [1, 8], strides = [1, 1]} : vector<8x8xf32> to vector<1x8xf32>
    %39 = vector.broadcast %37 : vector<8x1xf32> to vector<8x8xf32>
    %40 = vector.broadcast %38 : vector<1x8xf32> to vector<8x8xf32>
    %41 = arith.mulf %39, %40 : vector<8x8xf32>
    %42 = arith.addf %36, %41 : vector<8x8xf32>
    %43 = vector.extract_strided_slice %0 {offsets = [0, 6], sizes = [8, 1], strides = [1, 1]} : vector<8x8xf32> to vector<8x1xf32>
    %44 = vector.extract_strided_slice %1 {offsets = [6, 0], sizes = [1, 8], strides = [1, 1]} : vector<8x8xf32> to vector<1x8xf32>
    %45 = vector.broadcast %43 : vector<8x1xf32> to vector<8x8xf32>
    %46 = vector.broadcast %44 : vector<1x8xf32> to vector<8x8xf32>
    %47 = arith.mulf %45, %46 : vector<8x8xf32>
    %48 = arith.addf %42, %47 : vector<8x8xf32>
    %49 = vector.extract_strided_slice %0 {offsets = [0, 7], sizes = [8, 1], strides = [1, 1]} : vector<8x8xf32> to vector<8x1xf32>
    %50 = vector.extract_strided_slice %1 {offsets = [7, 0], sizes = [1, 8], strides = [1, 1]} : vector<8x8xf32> to vector<1x8xf32>
    %51 = vector.broadcast %49 : vector<8x1xf32> to vector<8x8xf32>
    %52 = vector.broadcast %50 : vector<1x8xf32> to vector<8x8xf32>
    %53 = arith.mulf %51, %52 : vector<8x8xf32>
    %54 = arith.addf %48, %53 : vector<8x8xf32>
    %cst = arith.constant 0.000000e+00 : f32
    %55 = vector.broadcast %cst : f32 to vector<8x8xf32>
    %56 = arith.maximumf %54, %55 : vector<8x8xf32>
    %57 = vector.shape_cast %4 : vector<1x128xf32> to vector<1x128xf32>
    %58 = vector.broadcast %57 : vector<1x128xf32> to vector<8x128xf32>
    %59 = vector.extract_strided_slice %56 {offsets = [0, 0], sizes = [8, 1], strides = [1, 1]} : vector<8x8xf32> to vector<8x1xf32>
    %60 = vector.extract_strided_slice %3 {offsets = [0, 0], sizes = [1, 128], strides = [1, 1]} : vector<8x128xf32> to vector<1x128xf32>
    %61 = vector.broadcast %59 : vector<8x1xf32> to vector<8x128xf32>
    %62 = vector.broadcast %60 : vector<1x128xf32> to vector<8x128xf32>
    %63 = arith.mulf %61, %62 : vector<8x128xf32>
    %64 = arith.addf %58, %63 : vector<8x128xf32>
    %65 = vector.extract_strided_slice %56 {offsets = [0, 1], sizes = [8, 1], strides = [1, 1]} : vector<8x8xf32> to vector<8x1xf32>
    %66 = vector.extract_strided_slice %3 {offsets = [1, 0], sizes = [1, 128], strides = [1, 1]} : vector<8x128xf32> to vector<1x128xf32>
    %67 = vector.broadcast %65 : vector<8x1xf32> to vector<8x128xf32>
    %68 = vector.broadcast %66 : vector<1x128xf32> to vector<8x128xf32>
    %69 = arith.mulf %67, %68 : vector<8x128xf32>
    %70 = arith.addf %64, %69 : vector<8x128xf32>
    %71 = vector.extract_strided_slice %56 {offsets = [0, 2], sizes = [8, 1], strides = [1, 1]} : vector<8x8xf32> to vector<8x1xf32>
    %72 = vector.extract_strided_slice %3 {offsets = [2, 0], sizes = [1, 128], strides = [1, 1]} : vector<8x128xf32> to vector<1x128xf32>
    %73 = vector.broadcast %71 : vector<8x1xf32> to vector<8x128xf32>
    %74 = vector.broadcast %72 : vector<1x128xf32> to vector<8x128xf32>
    %75 = arith.mulf %73, %74 : vector<8x128xf32>
    %76 = arith.addf %70, %75 : vector<8x128xf32>
    %77 = vector.extract_strided_slice %56 {offsets = [0, 3], sizes = [8, 1], strides = [1, 1]} : vector<8x8xf32> to vector<8x1xf32>
    %78 = vector.extract_strided_slice %3 {offsets = [3, 0], sizes = [1, 128], strides = [1, 1]} : vector<8x128xf32> to vector<1x128xf32>
    %79 = vector.broadcast %77 : vector<8x1xf32> to vector<8x128xf32>
    %80 = vector.broadcast %78 : vector<1x128xf32> to vector<8x128xf32>
    %81 = arith.mulf %79, %80 : vector<8x128xf32>
    %82 = arith.addf %76, %81 : vector<8x128xf32>
    %83 = vector.extract_strided_slice %56 {offsets = [0, 4], sizes = [8, 1], strides = [1, 1]} : vector<8x8xf32> to vector<8x1xf32>
    %84 = vector.extract_strided_slice %3 {offsets = [4, 0], sizes = [1, 128], strides = [1, 1]} : vector<8x128xf32> to vector<1x128xf32>
    %85 = vector.broadcast %83 : vector<8x1xf32> to vector<8x128xf32>
    %86 = vector.broadcast %84 : vector<1x128xf32> to vector<8x128xf32>
    %87 = arith.mulf %85, %86 : vector<8x128xf32>
    %88 = arith.addf %82, %87 : vector<8x128xf32>
    %89 = vector.extract_strided_slice %56 {offsets = [0, 5], sizes = [8, 1], strides = [1, 1]} : vector<8x8xf32> to vector<8x1xf32>
    %90 = vector.extract_strided_slice %3 {offsets = [5, 0], sizes = [1, 128], strides = [1, 1]} : vector<8x128xf32> to vector<1x128xf32>
    %91 = vector.broadcast %89 : vector<8x1xf32> to vector<8x128xf32>
    %92 = vector.broadcast %90 : vector<1x128xf32> to vector<8x128xf32>
    %93 = arith.mulf %91, %92 : vector<8x128xf32>
    %94 = arith.addf %88, %93 : vector<8x128xf32>
    %95 = vector.extract_strided_slice %56 {offsets = [0, 6], sizes = [8, 1], strides = [1, 1]} : vector<8x8xf32> to vector<8x1xf32>
    %96 = vector.extract_strided_slice %3 {offsets = [6, 0], sizes = [1, 128], strides = [1, 1]} : vector<8x128xf32> to vector<1x128xf32>
    %97 = vector.broadcast %95 : vector<8x1xf32> to vector<8x128xf32>
    %98 = vector.broadcast %96 : vector<1x128xf32> to vector<8x128xf32>
    %99 = arith.mulf %97, %98 : vector<8x128xf32>
    %100 = arith.addf %94, %99 : vector<8x128xf32>
    %101 = vector.extract_strided_slice %56 {offsets = [0, 7], sizes = [8, 1], strides = [1, 1]} : vector<8x8xf32> to vector<8x1xf32>
    %102 = vector.extract_strided_slice %3 {offsets = [7, 0], sizes = [1, 128], strides = [1, 1]} : vector<8x128xf32> to vector<1x128xf32>
    %103 = vector.broadcast %101 : vector<8x1xf32> to vector<8x128xf32>
    %104 = vector.broadcast %102 : vector<1x128xf32> to vector<8x128xf32>
    %105 = arith.mulf %103, %104 : vector<8x128xf32>
    %106 = arith.addf %100, %105 : vector<8x128xf32>
    %cst_6 = arith.constant dense<0xFF800000> : vector<8xf32>
    %107 = vector.multi_reduction <maximumf>, %106, %cst_6 [1] : vector<8x128xf32> to vector<8xf32>
    %108 = vector.shape_cast %107 : vector<8xf32> to vector<8x1xf32>
    %109 = vector.broadcast %108 : vector<8x1xf32> to vector<8x128xf32>
    %110 = arith.subf %106, %109 : vector<8x128xf32>
    %111 = math.exp %110 : vector<8x128xf32>
    %cst_7 = arith.constant dense<0.000000e+00> : vector<8xf32>
    %112 = vector.multi_reduction <add>, %111, %cst_7 [1] : vector<8x128xf32> to vector<8xf32>
    %113 = vector.shape_cast %112 : vector<8xf32> to vector<8x1xf32>
    %114 = tpu.reciprocal %113 {approx = true} : vector<8x1xf32> -> vector<8x1xf32>
    %115 = arith.mulf %113, %114 : vector<8x1xf32>
    %cst_8 = arith.constant 2.000000e+00 : f32
    %116 = vector.broadcast %cst_8 : f32 to vector<8x1xf32>
    %117 = arith.subf %116, %115 : vector<8x1xf32>
    %118 = arith.mulf %114, %117 : vector<8x1xf32>
    %119 = vector.broadcast %118 : vector<8x1xf32> to vector<8x128xf32>
    %120 = arith.mulf %111, %119 : vector<8x128xf32>
    %c0_9 = arith.constant 0 : index
    %c0_10 = arith.constant 0 : index
    %121 = vector.load %arg3[%c0_9, %c0_10] : memref<8x128xf32, #tpu.memory_space<vmem>>, vector<8x128xf32>
    tpu.vector_store %arg3[%c0_9, %c0_10], %120 {strides = array<i32>} : memref<8x128xf32, #tpu.memory_space<vmem>>, vector<8x128xf32>,
    return
  }
  func.func @transform_0(%arg0: i32) -> (i32, i32) {
    %c0_i32 = arith.constant 0 : i32
    %c0_i32_0 = arith.constant 0 : i32
    %c0_i32_1 = arith.constant 0 : i32
    return %c0_i32, %c0_i32_0 : i32, i32
  }
  func.func @transform_1(%arg0: i32) -> (i32, i32) {
    %c0_i32 = arith.constant 0 : i32
    %c0_i32_0 = arith.constant 0 : i32
    return %arg0, %c0_i32 : i32, i32
  }
  func.func @transform_2(%arg0: i32) -> (i32, i32) {
    %c0_i32 = arith.constant 0 : i32
    %c0_i32_0 = arith.constant 0 : i32
    return %arg0, %c0_i32 : i32, i32
  }
}

</mosaic_0001>

<bundles_post_ra>
// kernel: agent_forward_batched.1
= control target key start
LH: loop header
LB: loop body
LE: loop exit
PB: predicated region body
PF: predicated region fallthrough
CT: control target
= control target key end

     0   :  { %7 = vsyncpa [#allocation3], 0  ;;  %s227_s12 = smov [#allocation2]   ;;  %s228_s14 = smov 128   ;;  %s262_s0 = inlined_call_operand.hbm [shape: f32[24,128], index: 0, kind: input, shape index: {}]   ;;  %s263_s1 = inlined_call_operand.vmem [shape: f32[8,8], index: 1, kind: input, shape index: {}]   ;;  %s264_s2 = inlined_call_operand.vmem [shape: f32[8,128], index: 2, kind: output, shape index: {}]  }
   0x1   :  { %s12_s11 = sshll.u32 %s262_s0, 4  ;;  %s14_s13 = sshll.u32 %s227_s12, 4  ;;  %s13_s11 = int_to_ptr.hbm [resolvable:$true] %s12_s11  ;;  %s15_s13 = int_to_ptr.vmem [resolvable:$true] %s14_s13 }
   0x2   :  { %s229_s15 = smov 8  }
   0x3   :  { %20 = dma.hbm_to_vmem [thread:$0]  %s13_s11, 384, %s15_s13, [#allocation3], %s228_s14, %s228_s14, %s229_s15  }
   0x4   :  { %225 = dma.done.wait [#allocation3], 384  }
   0x5   :  { %226 = vsyncadd [#allocation3], 4294966912  ;;  %v230_v0 = vmov 0   ;;  %v231_v1 = vmov 2   ;;  %v232_v2 = vmov 4   ;;  %v27_v3 = vld [vmem:[%s263_s1] sm:$0xff] }
   0x6   :  { %178 = vset.pattern.permute.xlu0 %v230_v0  ;;  %180 = vset.pattern.permute.xlu1 %v231_v1  ;;  %v233_v4 = vmov 1   ;;  %v234_v5 = vmov 3   ;;  %v235_v6 = vmov 5   ;;  %v236_v7 = vmov 6   ;;  %v28_v10 = vld [vmem:[#allocation2] sm:$0xff]  ;;  %v30_v44 = vld [vmem:[#allocation2 + $0x8] sm:$0xff] }
   0x7   :  { %182 = vset.pattern.permute.xlu2 %v232_v2  ;;  %35 = vperm.xlu0 %178, %v27_v3   ;;  %v237_v8 = vmov 7   ;;  %v38_v13 = vperm.slane %v28_v10, 0  ;;  %v195_v14 = vld [vmem:[#allocation2 + $0x10] ss:$0 sm:$0xff]  ;;  %v45_v16 = vperm.slane %v28_v10, 1  ;;  %v52_v18 = vperm.slane %v28_v10, 2 }
   0x8   :  { %49 = vperm.xlu1 %180, %v27_v3   ;;  %63 = vperm.xlu2 %182, %v27_v3   ;;  %v59_v23 = vperm.slane %v28_v10, 3  ;;  %v66_v25 = vperm.slane %v28_v10, 4  ;;  %v73_v29 = vperm.slane %v28_v10, 5  ;;  %v80_v30 = vperm.slane %v28_v10, 6  ;;  %v196_v48 = vld [vmem:[#allocation2 + $0x11] ss:$0 sm:$0xff] }
   0x9   :  { %v87_v33 = vperm.slane %v28_v10, 7  ;;  %v97_v45 = vperm.slane %v30_v44, 0  ;;  %v104_v49 = vperm.slane %v30_v44, 1  ;;  %v111_v53 = vperm.slane %v30_v44, 2 }
   0xa   :  { %v118_v56 = vperm.slane %v30_v44, 3  ;;  %v125_v59 = vperm.slane %v30_v44, 4 }
   0xf   :  { %179 = vset.pattern.permute.xlu0 %v233_v4 }
  0x10   :  { %181 = vset.pattern.permute.xlu1 %v234_v5  ;;  %42 = vperm.xlu0 %179, %v27_v3  }
  0x11   :  { %56 = vperm.xlu1 %181, %v27_v3   ;;  %183 = vset.pattern.permute.xlu2 %v235_v6 }
  0x12   :  { %70 = vperm.xlu2 %183, %v27_v3  }
  0x18   :  { %186 = vset.pattern.permute.xlu0 %v230_v0 }
  0x19   :  { %184 = vset.pattern.permute.xlu1 %v236_v7 }
  0x1a   :  { %77 = vperm.xlu1 %184, %v27_v3   ;;  %185 = vset.pattern.permute.xlu2 %v237_v8 }
  0x1b   :  { %84 = vperm.xlu2 %185, %v27_v3  }
  0x22   :  { %187 = vset.pattern.permute.xlu1 %v233_v4  ;;  %v139_v4 = vperm.slane %v30_v44, 6 }
  0x23   :  { %188 = vset.pattern.permute.xlu2 %v231_v1  ;;  %v132_v1 = vperm.slane %v30_v44, 5 }
  0x62   :  { %v64_v9 = vpop.permute.xlu2 %63 }
  0x63   :  { %v67_v31 = vmul.f32 %v66_v25, %v64_v9 }
  0x6c   :  { %v71_v17 = vpop.permute.xlu2 %70 }
  0x6d   :  { %v74_v36 = vmul.f32 %v73_v29, %v71_v17 }
  0x75   :  { %v85_v34 = vpop.permute.xlu2 %84 }
  0x76   :  { %v88_v40 = vmul.f32 %v87_v33, %v85_v34 }
  0x79   :  { %v36_v11 = vpop.permute.xlu0 %35 }
  0x7a   :  { %v50_v12 = vpop.permute.xlu1 %49  ;;  %v39_v15 = vmul.f32 %v38_v13, %v36_v11 }
  0x7b   :  { %v53_v24 = vmul.f32 %v52_v18, %v50_v12 }
  0x7c   :  { %v40_v21 = vadd.f32 %v195_v14, %v39_v15 }
  0x82   :  { %v43_v19 = vpop.permute.xlu0 %42 }
  0x83   :  { %v57_v20 = vpop.permute.xlu1 %56  ;;  %v46_v22 = vmul.f32 %v45_v16, %v43_v19 }
  0x84   :  { %v60_v28 = vmul.f32 %v59_v23, %v57_v20 }
  0x85   :  { %v47_v26 = vadd.f32 %v46_v22, %v40_v21 }
  0x87   :  { %v54_v27 = vadd.f32 %v53_v24, %v47_v26 }
  0x89   :  { %v61_v32 = vadd.f32 %v60_v28, %v54_v27 }
  0x8b   :  { %v68_v35 = vadd.f32 %v67_v31, %v61_v32 }
  0x8c   :  { %v78_v37 = vpop.permute.xlu1 %77 }
  0x8d   :  { %v81_v38 = vmul.f32 %v80_v30, %v78_v37  ;;  %v75_v39 = vadd.f32 %v74_v36, %v68_v35 }
  0x8f   :  { %v82_v41 = vadd.f32 %v81_v38, %v75_v39 }
  0x91   :  { %v89_v42 = vadd.f32 %v88_v40, %v82_v41 }
  0x93   :  { %v90_v43 = vmax.f32 %v89_v42, 0.0 }
  0x95   :  { %108 = vperm.xlu2 %188, %v90_v43   ;;  %101 = vperm.xlu1 %187, %v90_v43  }
  0x96   :  { %94 = vperm.xlu0 %186, %v90_v43  }
  0x9d   :  { %190 = vset.pattern.permute.xlu2 %v232_v2  ;;  %189 = vset.pattern.permute.xlu1 %v234_v5  ;;  %v146_v5 = vperm.slane %v30_v44, 7 }
  0x9e   :  { %191 = vset.pattern.permute.xlu0 %v235_v6  ;;  %122 = vperm.xlu2 %190, %v90_v43  }
  0x9f   :  { %115 = vperm.xlu1 %189, %v90_v43   ;;  %129 = vperm.xlu0 %191, %v90_v43  }
  0xa6   :  { %193 = vset.pattern.permute.xlu2 %v237_v8 }
  0xa7   :  { %192 = vset.pattern.permute.xlu1 %v236_v7  ;;  %143 = vperm.xlu2 %193, %v90_v43  }
  0xa8   :  { %136 = vperm.xlu1 %192, %v90_v43   ;;  %194 = vset.pattern.permute.xlu0 %v237_v8 }
  0xef   :  { %v109_v46 = vpop.permute.xlu2 %108 }
  0xf0   :  { %v112_v57 = vmul.f32 %v111_v53, %v109_v46 }
  0xf8   :  { %v123_v58 = vpop.permute.xlu2 %122 }
  0xf9   :  { %v126_v0 = vmul.f32 %v125_v59, %v123_v58 }
 0x101   :  { %v144_v7 = vpop.permute.xlu2 %143 }
 0x102   :  { %v147_v11 = vmul.f32 %v146_v5, %v144_v7 }
 0x107   :  { %v102_v47 = vpop.permute.xlu1 %101 }
 0x108   :  { %v95_v50 = vpop.permute.xlu0 %94  ;;  %v105_v54 = vmul.f32 %v104_v49, %v102_v47 }
 0x109   :  { %v98_v51 = vmul.f32 %v97_v45, %v95_v50 }
 0x10b   :  { %v99_v52 = vadd.f32 %v196_v48, %v98_v51 }
 0x10d   :  { %v106_v55 = vadd.f32 %v105_v54, %v99_v52 }
 0x10f   :  { %v113_v61 = vadd.f32 %v112_v57, %v106_v55 }
 0x111   :  { %v116_v60 = vpop.permute.xlu1 %115  ;;  %v130_v2 = vpop.permute.xlu0 %129 }
 0x112   :  { %v119_v62 = vmul.f32 %v118_v56, %v116_v60  ;;  %v133_v6 = vmul.f32 %v132_v1, %v130_v2 }
 0x114   :  { %v120_v63 = vadd.f32 %v119_v62, %v113_v61 }
 0x116   :  { %v127_v3 = vadd.f32 %v126_v0, %v120_v63 }
 0x118   :  { %v134_v9 = vadd.f32 %v133_v6, %v127_v3 }
 0x11a   :  { %v137_v8 = vpop.permute.xlu1 %136 }
 0x11b   :  { %v140_v10 = vmul.f32 %v139_v4, %v137_v8 }
 0x11d   :  { %v141_v12 = vadd.f32 %v140_v10, %v134_v9 }
 0x11f   :  { %v148_v13 = vadd.f32 %v147_v11, %v141_v12 }
 0x121   :  { %149 = vmax.xlane.f32.xlu1 %v148_v13 }
 0x194   :  { %v150_v14 = vpop.xlane.xlu1 %149 }
 0x195   :  { %v151_v15 = vsub.f32 %v148_v13, %v150_v14 }
 0x197   :  { %v152_v16 = vmul.f32 1.442695, %v151_v15 }
 0x199   :  { %197 = vpow2.f32 %v152_v16 }
 0x19f   :  { %v198_v17 = vpop.eup %197 }
 0x1a0   :  { %154 = vadd.xlane.f32.xlu2 %v198_v17 }
 0x213   :  { %v155_v18 = vpop.xlane.xlu2 %154 }
 0x214   :  { %199 = vrcp.f32 %v155_v18 }
 0x21a   :  { %v200_v19 = vpop.eup %199 }
 0x21b   :  { %v157_v20 = vmul.f32 %v200_v19, %v155_v18 }
 0x21d   :  { %v158_v21 = vsub.f32 2.0, %v157_v20 }
 0x21f   :  { %v159_v22 = vmul.f32 %v200_v19, %v158_v21 }
 0x221   :  { %v160_v23 = vmul.f32 %v198_v17, %v159_v22 }
 0x223   :  { %161 = vst [vmem:[%s264_s2] sm:$0xff] %v160_v23 }
 0x224   :  { %166 = vsyncpa [#allocation3], 1 }

</bundles_post_ra>
